<compile_context>
chip_gen: v5e
topology: v5e:2x2
jax: 0.10.0
libtpu: 0.0.40
codegen_flags: <defaults>
</compile_context>

<pallas_src>
import jax
import jax.numpy as jnp
import numpy as np
from jax.experimental import pallas as pl
from jax.experimental.pallas import tpu as pltpu

# Module constants implied by the chosen instantiation.
C, H, W = 4, 16, 16
POOL = 8
PH, PW = H // POOL, W // POOL          # 2, 2
N_CLASSES = 10
M_PAD = 16                             # m contraction dim padded 10 -> 16
F_IN = C * PH * PW                     # linear_first_size = 16
H1 = 32                                # width_linear[0]
H2 = 32                                # width_linear_after_concat[0]
K_FULL = C * H * W                     # 1024 (fused pool+Linear contraction dim)
OUT_PAD = 128                          # lane-dense output width (>= N_CLASSES)
BATCH_TILE_MAX = 1024                  # raised from 128 (perf review)


def _round_up(n, m):
    return ((n + m - 1) // m) * m


def metanet_kernel(x_ref, m_ref, w1_ref, b1_ref, w2x_ref, w2m_ref, b2_ref,
                   w3_ref, b3_ref, out_ref):
    # Fused avg_pool2d(x, 8) + view(-1, 16) + Linear(16, 32) + ReLU:
    # W1_big already contains (W1 / 64) replicated per pooling-window element,
    # so a single [tile, 1024] x [1024, 32] matmul is numerically identical.
    h1 = jnp.dot(x_ref[...], w1_ref[...],
                 preferred_element_type=jnp.float32) + b1_ref[...]
    h1 = jnp.maximum(h1, 0.0)

    # torch.cat((x, m), dim=1) -> Linear(42, 32) -> ReLU, with the concat
    # folded into two matmuls against the split (and m-padded) weight matrix.
    h2 = (jnp.dot(h1, w2x_ref[...], preferred_element_type=jnp.float32)
          + jnp.dot(m_ref[...], w2m_ref[...], preferred_element_type=jnp.float32)
          + b2_ref[...])
    h2 = jnp.maximum(h2, 0.0)

    # Final Linear(32, n_classes), zero-padded to 128 lanes for a dense store.
    out_ref[...] = (jnp.dot(h2, w3_ref[...], preferred_element_type=jnp.float32)
                    + b3_ref[...])


def prepare_params(params):
    """One-time weight preprocessing (hoisted out of the forward path)."""
    w1, b1, w2, b2, w3, b3 = params

    # Map each flat NCHW index k -> pooled feature index (c, ph, pw), then
    # expand W1.T [16, 32] into W1_big [1024, 32] with a 1/64 pooling factor.
    flat = np.arange(K_FULL)
    c_idx = flat // (H * W)
    h_idx = (flat // W) % H
    w_idx = flat % W
    feat_idx = c_idx * (PH * PW) + (h_idx // POOL) * PW + (w_idx // POOL)
    w1_big = (jnp.asarray(w1, jnp.float32).T[feat_idx, :]
              / float(POOL * POOL))                       # [1024, 32]

    b1r = b1.reshape(1, -1).astype(jnp.float32)           # [1, 32]
    w2x = w2[:, :H1].T.astype(jnp.float32)                # [32, 32] (h1 columns)
    # m columns of W2, zero-padded 10 -> 16 rows (sublane-aligned contraction).
    w2m = jnp.zeros((M_PAD, H2), jnp.float32).at[:N_CLASSES, :].set(
        w2[:, H1:].T.astype(jnp.float32))                 # [16, 32]
    b2r = b2.reshape(1, -1).astype(jnp.float32)           # [1, 32]

    # Pad the final projection to 128 output lanes (dense vst on the output).
    w3p = jnp.zeros((H2, OUT_PAD), jnp.float32).at[:, :N_CLASSES].set(
        w3.T.astype(jnp.float32))
    b3p = jnp.zeros((1, OUT_PAD), jnp.float32).at[:, :N_CLASSES].set(
        b3.reshape(1, -1).astype(jnp.float32))
    return (w1_big, b1r, w2x, w2m, b2r, w3p, b3p)


@jax.jit
def metanet_forward(x, m, prep):
    """x: [B, C, H, W] f32 (NCHW), m: [B, N_CLASSES] f32."""
    w1_big, b1r, w2x, w2m, b2r, w3p, b3p = prep
    bsz = x.shape[0]

    # Tile: big enough to amortize per-step overhead (up to 1024 rows), but
    # capped at ceil(bsz/2) rounded to 8 so large batches give >= 2 grid steps
    # (both v7x TensorCores via the "parallel" batch axis).
    tb = min(BATCH_TILE_MAX, max(8, _round_up(pl.cdiv(bsz, 2), 8)))
    grid = (pl.cdiv(bsz, tb),)        # ragged last block handled by Pallas

    # Layout-preserving view; no wrapper-side batch padding (no extra HBM copy).
    x_flat = x.reshape(bsz, K_FULL).astype(jnp.float32)
    # Pad m's feature dim 10 -> 16 (tiny: 24 B/row).
    m_p = jnp.zeros((bsz, M_PAD), jnp.float32).at[:, :N_CLASSES].set(
        m.astype(jnp.float32))

    flops = 2 * bsz * (K_FULL * H1 + H1 * H2 + M_PAD * H2 + H2 * OUT_PAD)
    bytes_accessed = 4 * (bsz * (K_FULL + M_PAD + OUT_PAD)
                          + K_FULL * H1 + H1 * H2 + M_PAD * H2
                          + H2 * OUT_PAD + H1 + H2 + OUT_PAD)

    out = pl.pallas_call(
        metanet_kernel,
        out_shape=jax.ShapeDtypeStruct((bsz, OUT_PAD), jnp.float32),
        grid_spec=pltpu.PrefetchScalarGridSpec(
            num_scalar_prefetch=0,
            grid=grid,
            in_specs=[
                pl.BlockSpec((tb, K_FULL), lambda i: (i, 0)),        # x tile
                pl.BlockSpec((tb, M_PAD), lambda i: (i, 0)),         # m tile (padded)
                pl.BlockSpec((K_FULL, H1), lambda i: (0, 0)),        # W1_big
                pl.BlockSpec((1, H1), lambda i: (0, 0)),             # b1
                pl.BlockSpec((H1, H2), lambda i: (0, 0)),            # W2 (h1 part)
                pl.BlockSpec((M_PAD, H2), lambda i: (0, 0)),         # W2 (m part, padded)
                pl.BlockSpec((1, H2), lambda i: (0, 0)),             # b2
                pl.BlockSpec((H2, OUT_PAD), lambda i: (0, 0)),       # W3 (padded)
                pl.BlockSpec((1, OUT_PAD), lambda i: (0, 0)),        # b3 (padded)
            ],
            out_specs=pl.BlockSpec((tb, OUT_PAD), lambda i: (i, 0)),
        ),
        compiler_params=pltpu.CompilerParams(
            dimension_semantics=("parallel",)),
        cost_estimate=pl.CostEstimate(flops=flops, transcendentals=0,
                                      bytes_accessed=bytes_accessed),
    )(x_flat, m_p, w1_big, b1r, w2x, w2m, b2r, w3p, b3p)

    # Compact [:, :10] view for the caller; known small traffic tax (callers
    # that can consume the lane-padded [B, 128] slab may skip this slice).
    return out[:, :N_CLASSES]


def metanet_ref(x, m, params):
    """Pure-JAX reference of the PyTorch forward, for verification."""
    w1, b1, w2, b2, w3, b3 = params
    bsz = x.shape[0]
    xp = x.reshape(bsz, C, PH, POOL, PW, POOL).mean(axis=(3, 5))  # avg_pool2d(x, 8)
    feat = xp.reshape(bsz, -1)                                    # view(-1, 16)
    h1 = jax.nn.relu(feat @ w1.T + b1)                            # Linear + ReLU
    cat = jnp.concatenate([h1, m], axis=1)                        # cat((x, m), dim=1)
    h2 = jax.nn.relu(cat @ w2.T + b2)                             # Linear(42,32)+ReLU
    return h2 @ w3.T + b3                                         # Linear(32, 10)


def init_params(key):
    """Deterministic init mimicking torch.nn.Linear default (U(-1/sqrt(fan_in), ..))."""
    def linear(key, fan_out, fan_in):
        kw, kb = jax.random.split(key)
        bound = 1.0 / np.sqrt(fan_in)
        w = jax.random.uniform(kw, (fan_out, fan_in), jnp.float32, -bound, bound)
        b = jax.random.uniform(kb, (fan_out,), jnp.float32, -bound, bound)
        return w, b

    k1, k2, k3 = jax.random.split(key, 3)
    w1, b1 = linear(k1, H1, F_IN)                 # Linear(16, 32)
    w2, b2 = linear(k2, H2, N_CLASSES + H1)       # Linear(42, 32)
    w3, b3 = linear(k3, N_CLASSES, H2)            # Linear(32, 10)
    return (w1, b1, w2, b2, w3, b3)
    # TODO(synk): self.added_layers is constructed in __init__ but never used in
    # forward(), so it is intentionally not materialized here.


if __name__ == "__main__":
    key = jax.random.PRNGKey(0)
    kx, kp = jax.random.split(key)

    B = 2
    x = jax.random.normal(kx, (B, C, H, W), jnp.float32)          # NCHW input
    labels = jnp.array([3, 7], jnp.int32)                         # "m" as class ids
    m = jax.nn.one_hot(labels, N_CLASSES, dtype=jnp.float32)      # one-hot path of forward

    params = init_params(kp)
    prep = prepare_params(params)                                 # hoisted weight prep

    out = metanet_forward(x, m, prep)
    out = jax.block_until_ready(out)

    ref = metanet_ref(x, m, params)
    np.testing.assert_allclose(np.asarray(out), np.asarray(ref), rtol=1e-5, atol=1e-5)
    assert out.shape == (B, N_CLASSES) and out.dtype == jnp.float32

    print("KERNEL_OK")
</pallas_src>

<mosaic_0001>
module attributes {stable_mosaic.version = 11 : i64} {
  func.func @metanet_kernel(%arg0: i32, %arg1: memref<8x1024xf32, #tpu.memory_space<vmem>>, %arg2: memref<8x16xf32, #tpu.memory_space<vmem>>, %arg3: memref<1024x32xf32, #tpu.memory_space<vmem>>, %arg4: memref<1x32xf32, #tpu.memory_space<vmem>>, %arg5: memref<32x32xf32, #tpu.memory_space<vmem>>, %arg6: memref<16x32xf32, #tpu.memory_space<vmem>>, %arg7: memref<1x32xf32, #tpu.memory_space<vmem>>, %arg8: memref<32x128xf32, #tpu.memory_space<vmem>>, %arg9: memref<1x128xf32, #tpu.memory_space<vmem>>, %arg10: memref<8x128xf32, #tpu.memory_space<vmem>>) attributes {dimension_semantics = [#tpu.dimension_semantics<parallel>], iteration_bounds = array<i64: 1>, scalar_prefetch = 0 : i64, scratch_operands = 0 : i64, tpu.core_type = #tpu.core_type<tc>, window_params = [{transform_indices = @transform_0, window_bounds = array<i64: 8, 1024>}, {transform_indices = @transform_1, window_bounds = array<i64: 8, 16>}, {pipeline_mode = #tpu.pipeline_mode<synchronous>, transform_indices = @transform_2, window_bounds = array<i64: 1024, 32>}, {pipeline_mode = #tpu.pipeline_mode<synchronous>, transform_indices = @transform_3, window_bounds = array<i64: 1, 32>}, {pipeline_mode = #tpu.pipeline_mode<synchronous>, transform_indices = @transform_4, window_bounds = array<i64: 32, 32>}, {pipeline_mode = #tpu.pipeline_mode<synchronous>, transform_indices = @transform_5, window_bounds = array<i64: 16, 32>}, {pipeline_mode = #tpu.pipeline_mode<synchronous>, transform_indices = @transform_6, window_bounds = array<i64: 1, 32>}, {pipeline_mode = #tpu.pipeline_mode<synchronous>, transform_indices = @transform_7, window_bounds = array<i64: 32, 128>}, {pipeline_mode = #tpu.pipeline_mode<synchronous>, transform_indices = @transform_8, window_bounds = array<i64: 1, 128>}, {transform_indices = @transform_9, window_bounds = array<i64: 8, 128>}]} {
    %c0 = arith.constant 0 : index
    %c0_0 = arith.constant 0 : index
    %0 = vector.load %arg1[%c0, %c0_0] : memref<8x1024xf32, #tpu.memory_space<vmem>>, vector<8x1024xf32>
    %c0_1 = arith.constant 0 : index
    %c0_2 = arith.constant 0 : index
    %1 = vector.load %arg3[%c0_1, %c0_2] : memref<1024x32xf32, #tpu.memory_space<vmem>>, vector<1024x32xf32>
    %cst = arith.constant dense<0.000000e+00> : vector<8x32xf32>
    %2 = tpu.matmul %0, %1, %cst {dimension_numbers = #tpu.dot_dimension_numbers<[1], [0], [0], [1], [0, 0, 1, 1], [], []>} : vector<8x1024xf32>, vector<1024x32xf32>, vector<8x32xf32> -> vector<8x32xf32>
    %c0_3 = arith.constant 0 : index
    %c0_4 = arith.constant 0 : index
    %3 = vector.load %arg4[%c0_3, %c0_4] : memref<1x32xf32, #tpu.memory_space<vmem>>, vector<1x32xf32>
    %4 = vector.broadcast %3 : vector<1x32xf32> to vector<8x32xf32>
    %5 = arith.addf %2, %4 : vector<8x32xf32>
    %cst_5 = arith.constant 0.000000e+00 : f32
    %6 = vector.broadcast %cst_5 : f32 to vector<8x32xf32>
    %7 = arith.maximumf %5, %6 : vector<8x32xf32>
    %c0_6 = arith.constant 0 : index
    %c0_7 = arith.constant 0 : index
    %8 = vector.load %arg5[%c0_6, %c0_7] : memref<32x32xf32, #tpu.memory_space<vmem>>, vector<32x32xf32>
    %cst_8 = arith.constant dense<0.000000e+00> : vector<8x32xf32>
    %9 = tpu.matmul %7, %8, %cst_8 {dimension_numbers = #tpu.dot_dimension_numbers<[1], [0], [0], [1], [0, 0, 1, 1], [], []>} : vector<8x32xf32>, vector<32x32xf32>, vector<8x32xf32> -> vector<8x32xf32>
    %c0_9 = arith.constant 0 : index
    %c0_10 = arith.constant 0 : index
    %10 = vector.load %arg2[%c0_9, %c0_10] : memref<8x16xf32, #tpu.memory_space<vmem>>, vector<8x16xf32>
    %c0_11 = arith.constant 0 : index
    %c0_12 = arith.constant 0 : index
    %11 = vector.load %arg6[%c0_11, %c0_12] : memref<16x32xf32, #tpu.memory_space<vmem>>, vector<16x32xf32>
    %cst_13 = arith.constant dense<0.000000e+00> : vector<8x32xf32>
    %12 = tpu.matmul %10, %11, %cst_13 {dimension_numbers = #tpu.dot_dimension_numbers<[1], [0], [0], [1], [0, 0, 1, 1], [], []>} : vector<8x16xf32>, vector<16x32xf32>, vector<8x32xf32> -> vector<8x32xf32>
    %13 = arith.addf %9, %12 : vector<8x32xf32>
    %c0_14 = arith.constant 0 : index
    %c0_15 = arith.constant 0 : index
    %14 = vector.load %arg7[%c0_14, %c0_15] : memref<1x32xf32, #tpu.memory_space<vmem>>, vector<1x32xf32>
    %15 = vector.broadcast %14 : vector<1x32xf32> to vector<8x32xf32>
    %16 = arith.addf %13, %15 : vector<8x32xf32>
    %cst_16 = arith.constant 0.000000e+00 : f32
    %17 = vector.broadcast %cst_16 : f32 to vector<8x32xf32>
    %18 = arith.maximumf %16, %17 : vector<8x32xf32>
    %c0_17 = arith.constant 0 : index
    %c0_18 = arith.constant 0 : index
    %19 = vector.load %arg8[%c0_17, %c0_18] : memref<32x128xf32, #tpu.memory_space<vmem>>, vector<32x128xf32>
    %cst_19 = arith.constant dense<0.000000e+00> : vector<8x128xf32>
    %20 = tpu.matmul %18, %19, %cst_19 {dimension_numbers = #tpu.dot_dimension_numbers<[1], [0], [0], [1], [0, 0, 1, 1], [], []>} : vector<8x32xf32>, vector<32x128xf32>, vector<8x128xf32> -> vector<8x128xf32>
    %c0_20 = arith.constant 0 : index
    %c0_21 = arith.constant 0 : index
    %21 = vector.load %arg9[%c0_20, %c0_21] : memref<1x128xf32, #tpu.memory_space<vmem>>, vector<1x128xf32>
    %22 = vector.broadcast %21 : vector<1x128xf32> to vector<8x128xf32>
    %23 = arith.addf %20, %22 : vector<8x128xf32>
    %c0_22 = arith.constant 0 : index
    %c0_23 = arith.constant 0 : index
    %24 = vector.load %arg10[%c0_22, %c0_23] : memref<8x128xf32, #tpu.memory_space<vmem>>, vector<8x128xf32>
    tpu.vector_store %arg10[%c0_22, %c0_23], %23 {strides = array<i32>} : memref<8x128xf32, #tpu.memory_space<vmem>>, vector<8x128xf32>,
    return
  }
  func.func @transform_0(%arg0: i32) -> (i32, i32) {
    %c0_i32 = arith.constant 0 : i32
    %c0_i32_0 = arith.constant 0 : i32
    return %arg0, %c0_i32 : i32, i32
  }
  func.func @transform_1(%arg0: i32) -> (i32, i32) {
    %c0_i32 = arith.constant 0 : i32
    %c0_i32_0 = arith.constant 0 : i32
    return %arg0, %c0_i32 : i32, i32
  }
  func.func @transform_2(%arg0: i32) -> (i32, i32) {
    %c0_i32 = arith.constant 0 : i32
    %c0_i32_0 = arith.constant 0 : i32
    %c0_i32_1 = arith.constant 0 : i32
    return %c0_i32, %c0_i32_0 : i32, i32
  }
  func.func @transform_3(%arg0: i32) -> (i32, i32) {
    %c0_i32 = arith.constant 0 : i32
    %c0_i32_0 = arith.constant 0 : i32
    %c0_i32_1 = arith.constant 0 : i32
    return %c0_i32, %c0_i32_0 : i32, i32
  }
  func.func @transform_4(%arg0: i32) -> (i32, i32) {
    %c0_i32 = arith.constant 0 : i32
    %c0_i32_0 = arith.constant 0 : i32
    %c0_i32_1 = arith.constant 0 : i32
    return %c0_i32, %c0_i32_0 : i32, i32
  }
  func.func @transform_5(%arg0: i32) -> (i32, i32) {
    %c0_i32 = arith.constant 0 : i32
    %c0_i32_0 = arith.constant 0 : i32
    %c0_i32_1 = arith.constant 0 : i32
    return %c0_i32, %c0_i32_0 : i32, i32
  }
  func.func @transform_6(%arg0: i32) -> (i32, i32) {
    %c0_i32 = arith.constant 0 : i32
    %c0_i32_0 = arith.constant 0 : i32
    %c0_i32_1 = arith.constant 0 : i32
    return %c0_i32, %c0_i32_0 : i32, i32
  }
  func.func @transform_7(%arg0: i32) -> (i32, i32) {
    %c0_i32 = arith.constant 0 : i32
    %c0_i32_0 = arith.constant 0 : i32
    %c0_i32_1 = arith.constant 0 : i32
    return %c0_i32, %c0_i32_0 : i32, i32
  }
  func.func @transform_8(%arg0: i32) -> (i32, i32) {
    %c0_i32 = arith.constant 0 : i32
    %c0_i32_0 = arith.constant 0 : i32
    %c0_i32_1 = arith.constant 0 : i32
    return %c0_i32, %c0_i32_0 : i32, i32
  }
  func.func @transform_9(%arg0: i32) -> (i32, i32) {
    %c0_i32 = arith.constant 0 : i32
    %c0_i32_0 = arith.constant 0 : i32
    return %arg0, %c0_i32 : i32, i32
  }
}

</mosaic_0001>

<bundles_post_ra>
// kernel: metanet_forward.1
= control target key start
LH: loop header
LB: loop body
LE: loop exit
PB: predicated region body
PF: predicated region fallthrough
CT: control target
= control target key end

     0   :  { %s1025_s0 = inlined_call_operand.vmem [shape: f32[2,1024], index: 0, kind: input, shape index: {}]   ;;  %s1026_s1 = inlined_call_operand.vmem [shape: f32[2,16], index: 1, kind: input, shape index: {}]   ;;  %s1027_s2 = inlined_call_operand.vmem [shape: f32[1024,32], index: 2, kind: input, shape index: {}]   ;;  %s1028_s3 = inlined_call_operand.vmem [shape: f32[1,32], index: 3, kind: input, shape index: {}]   ;;  %s1029_s4 = inlined_call_operand.vmem [shape: f32[32,32], index: 4, kind: input, shape index: {}]   ;;  %s1030_s5 = inlined_call_operand.vmem [shape: f32[16,32], index: 5, kind: input, shape index: {}]   ;;  %s1031_s6 = inlined_call_operand.vmem [shape: f32[1,32], index: 6, kind: input, shape index: {}]   ;;  %s1032_s7 = inlined_call_operand.vmem [shape: f32[32,128], index: 7, kind: input, shape index: {}]   ;;  %s1033_s8 = inlined_call_operand.vmem [shape: f32[1,128], index: 8, kind: input, shape index: {}]   ;;  %s1034_s9 = inlined_call_operand.hbm [shape: f32[2,128], index: 9, kind: output, shape index: {}]  }
   0x1   :  { %v88_v0 = vld [vmem:[%s1027_s2 + $0x178] sm:$0xff] }
   0x2   :  { %14 = vsyncpa [#allocation3], 0  ;;  %v56_v1 = vld [vmem:[%s1027_s2 + $0x78] sm:$0xff]  ;;  %252 = vmatpush.msra.mxu2 %v88_v0  ;;  %v87_v2 = vld [vmem:[%s1027_s2 + $0x170] sm:$0xff]  ;;  %vm380_vm0 = vcmask 130048   ;;  %vm404_vm1 = vcmask 261120  }
   0x3   :  { %212 = vmatpush.msra.mxu0 %v56_v1  ;;  %v104_v3 = vld [vmem:[%s1027_s2 + $0x1f8] sm:$0xff]  ;;  %v55_v4 = vld [vmem:[%s1027_s2 + $0x70] sm:$0xff]  ;;  %v86_v6 = vld [vmem:[%s1027_s2 + $0x168] sm:$0xff] }
   0x4   :  { %272 = vmatpush.msra.mxu3 %v104_v3  ;;  %v72_v5 = vld [vmem:[%s1027_s2 + $0xf8] sm:$0xff]  ;;  %v103_v7 = vld [vmem:[%s1027_s2 + $0x1f0] sm:$0xff]  ;;  %253 = vmatpush.msra.mxu2 %v87_v2  ;;  %v54_v8 = vld [vmem:[%s1027_s2 + $0x68] sm:$0xff] }
   0x5   :  { %213 = vmatpush.msra.mxu0 %v55_v4  ;;  %v71_v9 = vld [vmem:[%s1027_s2 + $0xf0] sm:$0xff]  ;;  %232 = vmatpush.msra.mxu1 %v72_v5  ;;  %v85_v10 = vld [vmem:[%s1027_s2 + $0x160] sm:$0xff]  ;;  %v102_v11 = vld [vmem:[%s1027_s2 + $0x1e8] sm:$0xff] }
   0x6   :  { %273 = vmatpush.msra.mxu3 %v103_v7  ;;  %v53_v12 = vld [vmem:[%s1027_s2 + $0x60] sm:$0xff]  ;;  %254 = vmatpush.msra.mxu2 %v86_v6  ;;  %v70_v13 = vld [vmem:[%s1027_s2 + $0xe8] sm:$0xff]  ;;  %v84_v15 = vld [vmem:[%s1027_s2 + $0x158] sm:$0xff] }
   0x7   :  { %214 = vmatpush.msra.mxu0 %v54_v8  ;;  %v101_v14 = vld [vmem:[%s1027_s2 + $0x1e0] sm:$0xff]  ;;  %233 = vmatpush.msra.mxu1 %v71_v9  ;;  %v52_v16 = vld [vmem:[%s1027_s2 + $0x58] sm:$0xff]  ;;  %v83_v19 = vld [vmem:[%s1027_s2 + $0x150] sm:$0xff] }
   0x8   :  { %274 = vmatpush.msra.mxu3 %v102_v11  ;;  %255 = vmatpush.msra.mxu2 %v85_v10  ;;  %v69_v17 = vld [vmem:[%s1027_s2 + $0xe0] sm:$0xff]  ;;  %v100_v18 = vld [vmem:[%s1027_s2 + $0x1d8] sm:$0xff]  ;;  %v51_v20 = vld [vmem:[%s1027_s2 + $0x50] sm:$0xff] }
   0x9   :  { %215 = vmatpush.msra.mxu0 %v53_v12  ;;  %234 = vmatpush.msra.mxu1 %v70_v13  ;;  %v68_v21 = vld [vmem:[%s1027_s2 + $0xd8] sm:$0xff]  ;;  %v99_v22 = vld [vmem:[%s1027_s2 + $0x1d0] sm:$0xff]  ;;  %v82_v23 = vld [vmem:[%s1027_s2 + $0x148] sm:$0xff] }
   0xa   :  { %275 = vmatpush.msra.mxu3 %v101_v14  ;;  %256 = vmatpush.msra.mxu2 %v84_v15  ;;  %v50_v24 = vld [vmem:[%s1027_s2 + $0x48] sm:$0xff]  ;;  %v67_v25 = vld [vmem:[%s1027_s2 + $0xd0] sm:$0xff]  ;;  %v81_v27 = vld [vmem:[%s1027_s2 + $0x140] sm:$0xff] }
   0xb   :  { %216 = vmatpush.msra.mxu0 %v52_v16  ;;  %235 = vmatpush.msra.mxu1 %v69_v17  ;;  %v98_v26 = vld [vmem:[%s1027_s2 + $0x1c8] sm:$0xff]  ;;  %v49_v28 = vld [vmem:[%s1027_s2 + $0x40] sm:$0xff]  ;;  %v80_v31 = vld [vmem:[%s1027_s2 + $0x138] sm:$0xff] }
   0xc   :  { %276 = vmatpush.msra.mxu3 %v100_v18  ;;  %257 = vmatpush.msra.mxu2 %v83_v19  ;;  %v66_v29 = vld [vmem:[%s1027_s2 + $0xc8] sm:$0xff]  ;;  %v97_v30 = vld [vmem:[%s1027_s2 + $0x1c0] sm:$0xff]  ;;  %v48_v32 = vld [vmem:[%s1027_s2 + $0x38] sm:$0xff] }
   0xd   :  { %217 = vmatpush.msra.mxu0 %v51_v20  ;;  %236 = vmatpush.msra.mxu1 %v68_v21  ;;  %v65_v33 = vld [vmem:[%s1027_s2 + $0xc0] sm:$0xff]  ;;  %v96_v34 = vld [vmem:[%s1027_s2 + $0x1b8] sm:$0xff]  ;;  %v79_v35 = vld [vmem:[%s1027_s2 + $0x130] sm:$0xff] }
   0xe   :  { %277 = vmatpush.msra.mxu3 %v99_v22  ;;  %258 = vmatpush.msra.mxu2 %v82_v23  ;;  %v47_v36 = vld [vmem:[%s1027_s2 + $0x30] sm:$0xff]  ;;  %v64_v37 = vld [vmem:[%s1027_s2 + $0xb8] sm:$0xff]  ;;  %v78_v39 = vld [vmem:[%s1027_s2 + $0x128] sm:$0xff] }
   0xf   :  { %218 = vmatpush.msra.mxu0 %v50_v24  ;;  %237 = vmatpush.msra.mxu1 %v67_v25  ;;  %v95_v38 = vld [vmem:[%s1027_s2 + $0x1b0] sm:$0xff]  ;;  %v46_v40 = vld [vmem:[%s1027_s2 + $0x28] sm:$0xff]  ;;  %v77_v43 = vld [vmem:[%s1027_s2 + $0x120] sm:$0xff] }
  0x10   :  { %278 = vmatpush.msra.mxu3 %v98_v26  ;;  %259 = vmatpush.msra.mxu2 %v81_v27  ;;  %v63_v41 = vld [vmem:[%s1027_s2 + $0xb0] sm:$0xff]  ;;  %v94_v42 = vld [vmem:[%s1027_s2 + $0x1a8] sm:$0xff]  ;;  %v45_v44 = vld [vmem:[%s1027_s2 + $0x20] sm:$0xff] }
  0x11   :  { %219 = vmatpush.msra.mxu0 %v49_v28  ;;  %238 = vmatpush.msra.mxu1 %v66_v29  ;;  %v62_v45 = vld [vmem:[%s1027_s2 + $0xa8] sm:$0xff]  ;;  %v93_v46 = vld [vmem:[%s1027_s2 + $0x1a0] sm:$0xff]  ;;  %v76_v47 = vld [vmem:[%s1027_s2 + $0x118] sm:$0xff] }
  0x12   :  { %279 = vmatpush.msra.mxu3 %v97_v30  ;;  %260 = vmatpush.msra.mxu2 %v80_v31  ;;  %v44_v48 = vld [vmem:[%s1027_s2 + $0x18] sm:$0xff]  ;;  %v61_v49 = vld [vmem:[%s1027_s2 + $0xa0] sm:$0xff]  ;;  %v75_v51 = vld [vmem:[%s1027_s2 + $0x110] sm:$0xff] }
  0x13   :  { %220 = vmatpush.msra.mxu0 %v48_v32  ;;  %239 = vmatpush.msra.mxu1 %v65_v33  ;;  %v92_v50 = vld [vmem:[%s1027_s2 + $0x198] sm:$0xff]  ;;  %v43_v52 = vld [vmem:[%s1027_s2 + $0x10] sm:$0xff]  ;;  %v74_v55 = vld [vmem:[%s1027_s2 + $0x108] sm:$0xff] }
  0x14   :  { %280 = vmatpush.msra.mxu3 %v96_v34  ;;  %261 = vmatpush.msra.mxu2 %v79_v35  ;;  %v60_v53 = vld [vmem:[%s1027_s2 + $0x98] sm:$0xff]  ;;  %v91_v54 = vld [vmem:[%s1027_s2 + $0x190] sm:$0xff]  ;;  %v42_v56 = vld [vmem:[%s1027_s2 + $0x8] sm:$0xff] }
  0x15   :  { %221 = vmatpush.msra.mxu0 %v47_v36  ;;  %240 = vmatpush.msra.mxu1 %v64_v37  ;;  %v59_v57 = vld [vmem:[%s1027_s2 + $0x90] sm:$0xff]  ;;  %v90_v58 = vld [vmem:[%s1027_s2 + $0x188] sm:$0xff]  ;;  %v73_v59 = vld [vmem:[%s1027_s2 + $0x100] sm:$0xff] }
  0x16   :  { %281 = vmatpush.msra.mxu3 %v95_v38  ;;  %262 = vmatpush.msra.mxu2 %v78_v39  ;;  %v41_v60 = vld [vmem:[%s1027_s2] sm:$0xff]  ;;  %v152_v61 = vld [vmem:[%s1027_s2 + $0x378] sm:$0xff]  ;;  %v58_v62 = vld [vmem:[%s1027_s2 + $0x88] sm:$0xff] }
  0x17   :  { %222 = vmatpush.msra.mxu0 %v46_v40  ;;  %241 = vmatpush.msra.mxu1 %v63_v41  ;;  %v89_v63 = vld [vmem:[%s1027_s2 + $0x180] sm:$0xff]  ;;  %v120_v0 = vld [vmem:[%s1027_s2 + $0x278] sm:$0xff]  ;;  %v151_v1 = vld [vmem:[%s1027_s2 + $0x370] sm:$0xff] }
  0x18   :  { %282 = vmatpush.msra.mxu3 %v94_v42  ;;  %263 = vmatpush.msra.mxu2 %v77_v43  ;;  %v168_v2 = vld [vmem:[%s1027_s2 + $0x3f8] sm:$0xff]  ;;  %v57_v3 = vld [vmem:[%s1027_s2 + $0x80] sm:$0xff]  ;;  %v119_v4 = vld [vmem:[%s1027_s2 + $0x270] sm:$0xff] }
  0x19   :  { %223 = vmatpush.msra.mxu0 %v45_v44  ;;  %242 = vmatpush.msra.mxu1 %v62_v45  ;;  %v136_v5 = vld [vmem:[%s1027_s2 + $0x2f8] sm:$0xff]  ;;  %v150_v6 = vld [vmem:[%s1027_s2 + $0x368] sm:$0xff]  ;;  %v167_v7 = vld [vmem:[%s1027_s2 + $0x3f0] sm:$0xff] }
  0x1a   :  { %283 = vmatpush.msra.mxu3 %v93_v46  ;;  %264 = vmatpush.msra.mxu2 %v76_v47  ;;  %v118_v8 = vld [vmem:[%s1027_s2 + $0x268] sm:$0xff]  ;;  %v135_v9 = vld [vmem:[%s1027_s2 + $0x2f0] sm:$0xff]  ;;  %v149_v10 = vld [vmem:[%s1027_s2 + $0x360] sm:$0xff] }
  0x1b   :  { %224 = vmatpush.msra.mxu0 %v44_v48  ;;  %243 = vmatpush.msra.mxu1 %v61_v49  ;;  %v166_v11 = vld [vmem:[%s1027_s2 + $0x3e8] sm:$0xff]  ;;  %v117_v12 = vld [vmem:[%s1027_s2 + $0x260] sm:$0xff]  ;;  %v35_v15 = vld [vmem:[%s1025_s0 + $0x10] sm:$0xff] }
  0x1c   :  { %284 = vmatpush.msra.mxu3 %v92_v50  ;;  %265 = vmatpush.msra.mxu2 %v75_v51  ;;  %v134_v13 = vld [vmem:[%s1027_s2 + $0x2e8] sm:$0xff]  ;;  %v33_v14 = vld [vmem:[%s1025_s0] sm:$0xff]  ;;  %v148_v16 = vld [vmem:[%s1027_s2 + $0x358] sm:$0xff]  ;;  %183 = vst [vmem:[#allocation1 + $0x1] ss:$4 sm:$0xff] %v35_v15 }
  0x1d   :  { %225 = vmatpush.msra.mxu0 %v43_v52  ;;  %244 = vmatpush.msra.mxu1 %v60_v53  ;;  %v37_v17 = vld [vmem:[%s1025_s0 + $0x20] sm:$0xff]  ;;  %v39_v18 = vld [vmem:[%s1025_s0 + $0x30] sm:$0xff]  ;;  %181 = vst [vmem:[#allocation1] ss:$4 sm:$0xff] %v33_v14  ;;  %v116_v20 = vld [vmem:[%s1027_s2 + $0x258] sm:$0xff] }
  0x1e   :  { %285 = vmatpush.msra.mxu3 %v91_v54  ;;  %266 = vmatpush.msra.mxu2 %v74_v55  ;;  %v165_v19 = vld [vmem:[%s1027_s2 + $0x3e0] sm:$0xff]  ;;  %v147_v22 = vld [vmem:[%s1027_s2 + $0x350] sm:$0xff]  ;;  %185 = vst [vmem:[#allocation1 + $0x2] ss:$4 sm:$0xff] %v37_v17  ;;  %v164_v23 = vld [vmem:[%s1027_s2 + $0x3d8] sm:$0xff] }
  0x1f   :  { %226 = vmatpush.msra.mxu0 %v42_v56  ;;  %245 = vmatpush.msra.mxu1 %v59_v57  ;;  %v133_v21 = vld [vmem:[%s1027_s2 + $0x2e0] sm:$0xff]  ;;  %v115_v24 = vld [vmem:[%s1027_s2 + $0x250] sm:$0xff]  ;;  %187 = vst [vmem:[#allocation1 + $0x3] ss:$4 sm:$0xff] %v39_v18  ;;  %v132_v25 = vld [vmem:[%s1027_s2 + $0x2d8] sm:$0xff] }
  0x20   :  { %286 = vmatpush.msra.mxu3 %v90_v58  ;;  %267 = vmatpush.msra.mxu2 %v73_v59  ;;  %v146_v26 = vld [vmem:[%s1027_s2 + $0x348] sm:$0xff]  ;;  %v163_v27 = vld [vmem:[%s1027_s2 + $0x3d0] sm:$0xff]  ;;  %v145_v30 = vld [vmem:[%s1027_s2 + $0x340] sm:$0xff] }
  0x21   :  { %227 = vmatpush.msra.mxu0 %v41_v60  ;;  %246 = vmatpush.msra.mxu1 %v58_v62  ;;  %v114_v28 = vld [vmem:[%s1027_s2 + $0x248] sm:$0xff]  ;;  %v131_v29 = vld [vmem:[%s1027_s2 + $0x2d0] sm:$0xff]  ;;  %v36_v32 = vld [vmem:[%s1025_s0 + $0x18] sm:$0xff] }
  0x22   :  { %332 = vmatpush.msrb.mxu2 %v152_v61  ;;  %287 = vmatpush.msra.mxu3 %v89_v63  ;;  %v34_v31 = vld [vmem:[%s1025_s0 + $0x8] sm:$0xff]  ;;  %v113_v35 = vld [vmem:[%s1027_s2 + $0x240] sm:$0xff]  ;;  %v144_v37 = vld [vmem:[%s1027_s2 + $0x338] sm:$0xff]  ;;  %191 = vst [vmem:[#allocation1 + $0x21] ss:$4 sm:$0xff] %v36_v32 }
  0x23   :  { %292 = vmatpush.msrb.mxu0 %v120_v0  ;;  %247 = vmatpush.msra.mxu1 %v57_v3  ;;  %v38_v33 = vld [vmem:[%s1025_s0 + $0x28] sm:$0xff]  ;;  %189 = vst [vmem:[#allocation1 + $0x20] ss:$4 sm:$0xff] %v34_v31  ;;  %v161_v38 = vld [vmem:[%s1027_s2 + $0x3c0] sm:$0xff]  ;;  %v112_v39 = vld [vmem:[%s1027_s2 + $0x238] sm:$0xff] }
  0x24   :  { %333 = vmatpush.msrb.mxu2 %v151_v1  ;;  %352 = vmatpush.msrb.mxu3 %v168_v2  ;;  %v162_v34 = vld [vmem:[%s1027_s2 + $0x3c8] sm:$0xff]  ;;  %v40_v40 = vld [vmem:[%s1025_s0 + $0x38] sm:$0xff]  ;;  %193 = vst [vmem:[#allocation1 + $0x22] ss:$4 sm:$0xff] %v38_v33  ;;  %v129_v41 = vld [vmem:[%s1027_s2 + $0x2c0] sm:$0xff] }
  0x25   :  { %293 = vmatpush.msrb.mxu0 %v119_v4  ;;  %312 = vmatpush.msrb.mxu1 %v136_v5  ;;  %v130_v36 = vld [vmem:[%s1027_s2 + $0x2c8] sm:$0xff]  ;;  %v143_v42 = vld [vmem:[%s1027_s2 + $0x330] sm:$0xff]  ;;  %v160_v43 = vld [vmem:[%s1027_s2 + $0x3b8] sm:$0xff]  ;;  %195 = vst [vmem:[#allocation1 + $0x23] ss:$4 sm:$0xff] %v40_v40 }
  0x26   :  { %334 = vmatpush.msrb.mxu2 %v150_v6  ;;  %353 = vmatpush.msrb.mxu3 %v167_v7  ;;  %v111_v44 = vld [vmem:[%s1027_s2 + $0x230] sm:$0xff]  ;;  %v128_v45 = vld [vmem:[%s1027_s2 + $0x2b8] sm:$0xff]  ;;  %v142_v46 = vld [vmem:[%s1027_s2 + $0x328] sm:$0xff] }
  0x27   :  { %294 = vmatpush.msrb.mxu0 %v118_v8  ;;  %313 = vmatpush.msrb.mxu1 %v135_v9  ;;  %v159_v47 = vld [vmem:[%s1027_s2 + $0x3b0] sm:$0xff]  ;;  %v110_v48 = vld [vmem:[%s1027_s2 + $0x228] sm:$0xff]  ;;  %v141_v50 = vld [vmem:[%s1027_s2 + $0x320] sm:$0xff] }
  0x28   :  { %335 = vmatpush.msrb.mxu2 %v149_v10  ;;  %354 = vmatpush.msrb.mxu3 %v166_v11  ;;  %v127_v49 = vld [vmem:[%s1027_s2 + $0x2b0] sm:$0xff]  ;;  %v158_v51 = vld [vmem:[%s1027_s2 + $0x3a8] sm:$0xff]  ;;  %v109_v53 = vld [vmem:[%s1027_s2 + $0x220] sm:$0xff] }
  0x29   :  { %295 = vmatpush.msrb.mxu0 %v117_v12  ;;  %314 = vmatpush.msrb.mxu1 %v134_v13  ;;  %v198_v52 = vld.sshfl [vmem:[#allocation1 + $0x10] sm:$0xff pattern:$0x73625140]  ;;  %v126_v54 = vld [vmem:[%s1027_s2 + $0x2a8] sm:$0xff]  ;;  %v140_v55 = vld [vmem:[%s1027_s2 + $0x318] sm:$0xff] }
  0x2a   :  { %336 = vmatpush.msrb.mxu2 %v148_v16  ;;  %355 = vmatpush.msrb.mxu3 %v165_v19  ;;  %v157_v56 = vld [vmem:[%s1027_s2 + $0x3a0] sm:$0xff]  ;;  %v199_v58 = vld.sshfl [vmem:[#allocation1 + $0x18] sm:$0xff pattern:$0x73625140]  ;;  %v139_v61 = vld [vmem:[%s1027_s2 + $0x310] sm:$0xff] }
  0x2b   :  { %296 = vmatpush.msrb.mxu0 %v116_v20  ;;  %315 = vmatpush.msrb.mxu1 %v133_v21  ;;  %v196_v57 = vld.sshfl [vmem:[#allocation1] sm:$0xff pattern:$0x73625140]  ;;  %v108_v59 = vld [vmem:[%s1027_s2 + $0x218] sm:$0xff]  ;;  %v107_v0 = vld [vmem:[%s1027_s2 + $0x210] sm:$0xff] }
  0x2c   :  { %337 = vmatpush.msrb.mxu2 %v147_v22  ;;  %356 = vmatpush.msrb.mxu3 %v164_v23  ;;  %v125_v60 = vld [vmem:[%s1027_s2 + $0x2a0] sm:$0xff]  ;;  %v156_v62 = vld [vmem:[%s1027_s2 + $0x398] sm:$0xff]  ;;  %v197_v63 = vld.sshfl [vmem:[#allocation1 + $0x8] sm:$0xff pattern:$0x73625140] }
  0x2d   :  { %297 = vmatpush.msrb.mxu0 %v115_v24  ;;  %316 = vmatpush.msrb.mxu1 %v132_v25  ;;  %v124_v1 = vld [vmem:[%s1027_s2 + $0x298] sm:$0xff]  ;;  %v138_v2 = vld [vmem:[%s1027_s2 + $0x308] sm:$0xff]  ;;  %v155_v3 = vld [vmem:[%s1027_s2 + $0x390] sm:$0xff] }
  0x2e   :  { %338 = vmatpush.msrb.mxu2 %v146_v26  ;;  %357 = vmatpush.msrb.mxu3 %v163_v27  ;;  %v106_v4 = vld [vmem:[%s1027_s2 + $0x208] sm:$0xff]  ;;  %v123_v5 = vld [vmem:[%s1027_s2 + $0x290] sm:$0xff]  ;;  %v137_v6 = vld [vmem:[%s1027_s2 + $0x300] sm:$0xff] }
  0x2f   :  { %298 = vmatpush.msrb.mxu0 %v114_v28  ;;  %317 = vmatpush.msrb.mxu1 %v131_v29  ;;  %v154_v7 = vld [vmem:[%s1027_s2 + $0x388] sm:$0xff]  ;;  %v202_v8 = vld.sshfl [vmem:[#allocation1 + $0x30] sm:$0xff pattern:$0x73625140]  ;;  %v105_v9 = vld [vmem:[%s1027_s2 + $0x200] sm:$0xff] }
  0x30   :  { %339 = vmatpush.msrb.mxu2 %v145_v30  ;;  %358 = vmatpush.msrb.mxu3 %v162_v34  ;;  %v122_v10 = vld [vmem:[%s1027_s2 + $0x288] sm:$0xff]  ;;  %v153_v11 = vld [vmem:[%s1027_s2 + $0x380] sm:$0xff]  ;;  %v203_v13 = vld.sshfl [vmem:[#allocation1 + $0x38] sm:$0xff pattern:$0x73625140] }
  0x31   :  { %299 = vmatpush.msrb.mxu0 %v113_v35  ;;  %318 = vmatpush.msrb.mxu1 %v130_v36  ;;  %v200_v12 = vld.sshfl [vmem:[#allocation1 + $0x20] sm:$0xff pattern:$0x73625140]  ;;  %v201_v15 = vld.sshfl [vmem:[#allocation1 + $0x28] sm:$0xff pattern:$0x73625140] }
  0x32   :  { %340 = vmatpush.msrb.mxu2 %v144_v37  ;;  %359 = vmatpush.msrb.mxu3 %v161_v38  ;;  %v121_v14 = vld [vmem:[%s1027_s2 + $0x280] sm:$0xff]  ;;  %v379_v16 = vld [vmem:[%s1030_s5 + $0x8] sm:$0xff]  ;;  %v376_v17 = vld [vmem:[%s1029_s4 + $0x18] sm:$0xff] }
  0x33   :  { %300 = vmatpush.msrb.mxu0 %v112_v39  ;;  %319 = vmatpush.msrb.mxu1 %v129_v41  ;;  %v375_v18 = vld [vmem:[%s1029_s4 + $0x10] sm:$0xff]  ;;  %v374_v19 = vld [vmem:[%s1029_s4 + $0x8] sm:$0xff]  ;;  %v378_v20 = vld [vmem:[%s1030_s5] sm:$0xff] }
  0x34   :  { %341 = vmatpush.msrb.mxu2 %v143_v42  ;;  %360 = vmatpush.msrb.mxu3 %v160_v43  ;;  %v373_v21 = vld [vmem:[%s1029_s4] sm:$0xff]  ;;  %v437_v23 = vld [vmem:[%s1032_s7 + $0x18] sm:$0xff]  ;;  %v436_v42 = vld [vmem:[%s1032_s7 + $0x10] sm:$0xff] }
  0x35   :  { %301 = vmatpush.msrb.mxu0 %v111_v44  ;;  %320 = vmatpush.msrb.mxu1 %v128_v45  ;;  %v377_v22 = vld [vmem:[%s1026_s1] sm:$0xff]  ;;  %v435_v43 = vld [vmem:[%s1032_s7 + $0x8] sm:$0xff] }
  0x36   :  { %342 = vmatpush.msrb.mxu2 %v142_v46  ;;  %361 = vmatpush.msrb.mxu3 %v159_v47  ;;  %v490_v24 = vld [vmem:[%s1028_s3] ss:$0 sm:$0xff] }
  0x37   :  { %302 = vmatpush.msrb.mxu0 %v110_v48  ;;  %321 = vmatpush.msrb.mxu1 %v127_v49  ;;  %v434_v44 = vld [vmem:[%s1032_s7] sm:$0xff] }
  0x38   :  { %343 = vmatpush.msrb.mxu2 %v141_v50  ;;  %362 = vmatpush.msrb.mxu3 %v158_v51  ;;  %v491_v46 = vld [vmem:[%s1031_s6] ss:$0 sm:$0xff] }
  0x39   :  { %268 = vmatmul.f32.vlgmr.msra.gmra.mxu2 %v198_v52  ;;  %303 = vmatpush.msrb.mxu0 %v109_v53  ;;  %v492_v51 = vld [vmem:[%s1033_s8] ss:$0 sm:$0xff] }
  0x3a   :  { %322 = vmatpush.msrb.mxu1 %v126_v54  ;;  %344 = vmatpush.msrb.mxu2 %v140_v55 }
  0x3b   :  { %363 = vmatpush.msrb.mxu3 %v157_v56  ;;  %228 = vmatmul.f32.vlgmr.msra.gmra.mxu0 %v196_v57 }
  0x3c   :  { %288 = vmatmul.f32.vlgmr.msra.gmra.mxu3 %v199_v58  ;;  %304 = vmatpush.msrb.mxu0 %v108_v59 }
  0x3d   :  { %323 = vmatpush.msrb.mxu1 %v125_v60  ;;  %345 = vmatpush.msrb.mxu2 %v139_v61 }
  0x3e   :  { %364 = vmatpush.msrb.mxu3 %v156_v62  ;;  %248 = vmatmul.f32.vlgmr.msra.gmra.mxu1 %v197_v63 }
  0x3f   :  { %305 = vmatpush.msrb.mxu0 %v107_v0  ;;  %324 = vmatpush.msrb.mxu1 %v124_v1 }
  0x40   :  { %346 = vmatpush.msrb.mxu2 %v138_v2  ;;  %365 = vmatpush.msrb.mxu3 %v155_v3 }
  0x41   :  { %306 = vmatpush.msrb.mxu0 %v106_v4  ;;  %325 = vmatpush.msrb.mxu1 %v123_v5 }
  0x42   :  { %347 = vmatpush.msrb.mxu2 %v137_v6  ;;  %366 = vmatpush.msrb.mxu3 %v154_v7 }
  0x43   :  { %348 = vmatmul.f32.vlgmr.msrb.gmra.mxu2 %v202_v8  ;;  %307 = vmatpush.msrb.mxu0 %v105_v9 }
  0x44   :  { %326 = vmatpush.msrb.mxu1 %v122_v10  ;;  %367 = vmatpush.msrb.mxu3 %v153_v11 }
  0x45   :  { %308 = vmatmul.f32.vlgmr.msrb.gmra.mxu0 %v200_v12  ;;  %368 = vmatmul.f32.vlgmr.msrb.gmra.mxu3 %v203_v13 }
  0x46   :  { %327 = vmatpush.msrb.mxu1 %v121_v14  ;;  %398 = vmatpush.msra.mxu0 %v379_v16 }
  0x47   :  { %328 = vmatmul.f32.vlgmr.msrb.gmra.mxu1 %v201_v15  ;;  %457 = vmatpush.msra.mxu2 %v437_v23 }
  0x48   :  { %420 = vmatpush.msra.mxu1 %v376_v17  ;;  %399 = vmatpush.msra.mxu0 %v378_v20 }
  0x49   :  { %458 = vmatpush.msra.mxu2 %v436_v42 }
  0x4a   :  { %421 = vmatpush.msra.mxu1 %v375_v18 }
  0x4b   :  { %459 = vmatpush.msra.mxu2 %v435_v43 }
  0x4c   :  { %422 = vmatpush.msra.mxu1 %v374_v19 }
  0x4d   :  { %484 = vmatmul.msk.f32.vlgmr.msra.gmra.mxu0 %vm380_vm0, %v377_v22  ;;  %460 = vmatpush.msra.mxu2 %v434_v44 }
  0x4e   :  { %423 = vmatpush.msra.mxu1 %v373_v21 }
  0xb8   :  { %v229_v25 = vpop.f32.mrf.mxu0 }
  0xb9   :  { %v230_v26 = vadd.f32 %v490_v24, %v229_v25 }
  0xbb   :  { %v249_v27 = vpop.f32.mrf.mxu1 }
  0xbc   :  { %v269_v28 = vpop.f32.mrf.mxu2  ;;  %v250_v29 = vadd.f32 %v249_v27, %v230_v26 }
  0xbe   :  { %v270_v30 = vadd.f32 %v269_v28, %v250_v29 }
  0xbf   :  { %v289_v31 = vpop.f32.mrf.mxu3 }
  0xc0   :  { %v290_v32 = vadd.f32 %v289_v31, %v270_v30 }
  0xc2   :  { %v309_v33 = vpop.f32.mrf.mxu0 }
  0xc3   :  { %v310_v34 = vadd.f32 %v309_v33, %v290_v32 }
  0xc4   :  { %v329_v35 = vpop.f32.mrf.mxu1 }
  0xc5   :  { %v330_v36 = vadd.f32 %v329_v35, %v310_v34 }
  0xc6   :  { %v349_v37 = vpop.f32.mrf.mxu2 }
  0xc7   :  { %v350_v38 = vadd.f32 %v349_v37, %v330_v36 }
  0xc8   :  { %v369_v39 = vpop.f32.mrf.mxu3 }
  0xc9   :  { %v370_v40 = vadd.f32 %v369_v39, %v350_v38 }
  0xca   :  { %v401_v45 = vpop.f32.mrf.mxu0 }
  0xcb   :  { %v372_v41 = vmax.f32 %v370_v40, 0.0 }
  0xcd   :  { %485 = vmatmul.msk.f32.vlgmr.msra.gmra.mxu1 %vm404_vm1, %v372_v41 }
 0x14a   :  { %v425_v47 = vpop.f32.mrf.mxu1 }
 0x14b   :  { %v426_v48 = vadd.f32 %v425_v47, %v401_v45 }
 0x14d   :  { %v432_v49 = vadd.f32 %v491_v46, %v426_v48 }
 0x14f   :  { %v433_v50 = vmax.f32 %v432_v49, 0.0 }
 0x151   :  { %486 = vmatmul.msk.f32.vlgmr.msra.gmra.mxu2 %vm404_vm1, %v433_v50 }
 0x1d4   :  { %v462_v52 = vpop.f32.mrf.mxu2 }
 0x1d5   :  { %v463_v53 = vadd.f32 %v492_v51, %v462_v52 }
 0x1d7   :  { %465 = vst [vmem:[#allocation2] sm:$0xff] %v463_v53 }
 0x1d8   :  { %469 = vsyncadd [#allocation3], 96  ;;  %s472_s28 = sshll.u32 %s1034_s9, 4  ;;  %s519_s29 = smov [#allocation2]   ;;  %s473_s28 = int_to_ptr.hbm [resolvable:$true] %s472_s28 }
 0x1d9   :  { %s470_s30 = sshll.u32 %s519_s29, 4  ;;  %s520_s6 = smov 32   ;;  %s471_s30 = int_to_ptr.vmem [resolvable:$true] %s470_s30 }
 0x1da   :  { %s521_s2 = smov 2  }
 0x1db   :  { %478 = dma.vmem_to_hbm [thread:$0]  %s471_s30, 32, %s473_s28, [#allocation3], %s520_s6, %s520_s6, %s521_s2  }
 0x1dc   :  { %517 = dma.done.wait [#allocation3], 128  }
 0x1dd   :  { %518 = vsyncadd [#allocation3], 4294967168 }
 0x1de   :  { %483 = vsyncpa [#allocation3], 1 }

</bundles_post_ra>
